<compile_context>
chip_gen: v5e
topology: v5e:2x2
jax: 0.10.0
libtpu: 0.0.40
codegen_flags: <defaults>
</compile_context>

<pallas_src>
import functools
import math

import jax
import jax.numpy as jnp
from jax.experimental import pallas as pl
from jax.experimental.pallas import tpu as pltpu


def _xent_kernel(lp_ref, tgt_ref, out_ref, acc_ref, *,
                 pad_index, smoothing, vocab_size, n_rows,
                 block_rows, block_vocab):
    """Accumulates sum_v t[row, v] * log_prob[row, v] for one row block."""
    j = pl.program_id(1)

    @pl.when(j == 0)
    def _():
        acc_ref[...] = jnp.zeros_like(acc_ref)

    lp = lp_ref[...].astype(jnp.float32)              # (bm, tv)
    tgt = tgt_ref[...]                                # (bm, 1) int32
    bm, tv = lp.shape

    col = j * block_vocab + jax.lax.broadcasted_iota(jnp.int32, (bm, tv), 1)
    is_tgt = col == tgt                               # (bm, tv)

    row_ok = tgt != pad_index                         # pad rows contribute 0
    if n_rows % block_rows != 0:                      # ragged row tail (static)
        row = (pl.program_id(0) * block_rows
               + jax.lax.broadcasted_iota(jnp.int32, (bm, 1), 0))
        row_ok = row_ok & (row < n_rows)

    if smoothing <= 0.0:
        # t is one-hot: only the target column contributes.
        elem = jnp.where(is_tgt & row_ok, lp, 0.0)
    else:
        u = smoothing / (vocab_size - 2)
        w = jnp.where(is_tgt, 1.0 - smoothing, u)     # smoothed target dist t
        w = jnp.where(col == pad_index, 0.0, w)       # pad column gets no mass
        mask = row_ok
        if vocab_size % block_vocab != 0:             # ragged vocab tail (static)
            mask = mask & (col < vocab_size)
        elem = jnp.where(mask, lp * w, 0.0)

    # lane-reduce to (bm, 1) partials; accumulate across vocab tiles in scratch
    acc_ref[...] += jnp.sum(elem, axis=1, keepdims=True)

    @pl.when(j == pl.num_programs(1) - 1)
    def _():
        out_ref[...] = jnp.sum(acc_ref[...], axis=0, keepdims=True)[None]


class XentLoss:
    """Cross-Entropy Loss with optional label smoothing (Pallas TPU)."""

    _LP_BLOCK_BYTES = 4 * 1024 * 1024     # ~4 MiB per lp block (double-buffered
                                          # blocks still fit v7x's smaller VMEM)
    _MAX_BLOCK_VOCAB = 4096
    _MAX_BLOCK_ROWS = 512
    _VMEM_LIMIT = 32 * 1024 * 1024

    def __init__(self, pad_index, smoothing=0.0, block_rows=None, block_vocab=None):
        self.pad_index = int(pad_index)
        self.smoothing = float(smoothing)
        self.block_rows = block_rows
        self.block_vocab = block_vocab

    def _tiles(self, n, vocab, itemsize):
        # vocab tile: whole vocab if small, else a lane-dense 128-aligned slab
        tv = self.block_vocab
        if tv is None:
            tv = vocab if vocab <= self._MAX_BLOCK_VOCAB else self._MAX_BLOCK_VOCAB
        tv = min(int(tv), vocab)
        if tv != vocab:
            tv = max(128, (tv // 128) * 128)
        # row tile: as many rows as fit the VMEM budget, multiple of 8, <= n
        bm = self.block_rows
        if bm is None:
            bm = self._LP_BLOCK_BYTES // max(1, tv * itemsize)
            bm = min(self._MAX_BLOCK_ROWS, bm)
        bm = int(bm)
        if n <= 8:
            bm = n
        else:
            bm = min(bm, (n // 8) * 8)
            bm = max(8, (bm // 8) * 8)
        return bm, tv

    def __call__(self, log_probs, targets):
        vocab = log_probs.shape[-1]
        lp = log_probs.reshape(-1, vocab)             # native dtype, no copy/pad
        tgt = targets.reshape(-1).astype(jnp.int32)
        n = lp.shape[0]
        tgt2d = tgt.reshape(n, 1)

        bm, tv = self._tiles(n, vocab, jnp.dtype(lp.dtype).itemsize)
        grid = (pl.cdiv(n, bm), pl.cdiv(vocab, tv))

        kernel = functools.partial(
            _xent_kernel,
            pad_index=self.pad_index,
            smoothing=self.smoothing,
            vocab_size=vocab,
            n_rows=n,
            block_rows=bm,
            block_vocab=tv,
        )

        partials = pl.pallas_call(
            kernel,
            out_shape=jax.ShapeDtypeStruct((grid[0], 1, 1), jnp.float32),
            grid_spec=pltpu.PrefetchScalarGridSpec(
                num_scalar_prefetch=0,
                grid=grid,
                in_specs=[
                    pl.BlockSpec((bm, tv), lambda i, j: (i, j)),
                    pl.BlockSpec((bm, 1), lambda i, j: (i, 0)),
                ],
                out_specs=pl.BlockSpec((1, 1, 1), lambda i, j: (i, 0, 0)),
                scratch_shapes=[pltpu.VMEM((bm, 1), jnp.float32)],
            ),
            compiler_params=pltpu.CompilerParams(
                dimension_semantics=("parallel", "arbitrary"),
                vmem_limit_bytes=self._VMEM_LIMIT,
            ),
        )(lp, tgt2d)

        weighted = jnp.sum(partials)                  # sum_rows sum_v t * log_prob
        if self.smoothing <= 0.0:
            # NLLLoss(ignore_index=pad, reduction='sum')
            return -weighted
        # KLDivLoss(reduction='sum') against the smoothed target distribution:
        #   loss = (#non-pad rows) * sum_v t*log t  -  sum_rows sum_v t*log_prob
        u = self.smoothing / (vocab - 2)
        const = ((1.0 - self.smoothing) * math.log(1.0 - self.smoothing)
                 + (vocab - 2) * u * math.log(u))
        n_nonpad = jnp.sum((tgt != self.pad_index).astype(jnp.float32))
        return const * n_nonpad - weighted


def _reference_loss(log_probs, targets, pad_index, smoothing):
    """Pure-JAX reference mirroring the PyTorch module semantics."""
    vocab = log_probs.shape[-1]
    lp = log_probs.reshape(-1, vocab).astype(jnp.float32)
    tgt = targets.reshape(-1).astype(jnp.int32)
    if smoothing <= 0.0:
        picked = jnp.take_along_axis(lp, tgt[:, None], axis=1)[:, 0]
        mask = (tgt != pad_index).astype(jnp.float32)
        return jnp.sum(-picked * mask)
    uniform = smoothing / (vocab - 2)
    onehot = jax.nn.one_hot(tgt, vocab, dtype=jnp.float32)
    t = onehot * (1.0 - smoothing) + (1.0 - onehot) * uniform
    t = t.at[:, pad_index].set(0.0)
    t = jnp.where((tgt == pad_index)[:, None], 0.0, t)
    log_t = jnp.log(jnp.where(t > 0, t, 1.0))
    return jnp.sum(jnp.where(t > 0, t * (log_t - lp), 0.0))


if __name__ == "__main__":
    key = jax.random.PRNGKey(0)
    batch, seq, vocab = 2, 8, 32
    pad_index = 1

    k1, k2 = jax.random.split(key)
    logits = jax.random.normal(k1, (batch, seq, vocab), dtype=jnp.float32)
    log_probs = jax.nn.log_softmax(logits, axis=-1)
    targets = jax.random.randint(k2, (batch, seq), 0, vocab, dtype=jnp.int32)
    # sprinkle some pad tokens so ignore_index / zero-row logic is exercised
    targets = targets.at[0, 5:].set(pad_index)
    targets = targets.at[1, 6:].set(pad_index)

    for smoothing in (0.0, 0.1):
        loss_fn = XentLoss(pad_index=pad_index, smoothing=smoothing)
        loss = jax.block_until_ready(loss_fn(log_probs, targets))
        ref = jax.block_until_ready(
            _reference_loss(log_probs, targets, pad_index, smoothing))
        assert jnp.allclose(loss, ref, rtol=1e-5, atol=1e-4), (smoothing, loss, ref)

    print("KERNEL_OK")
</pallas_src>

<mosaic_0001>
module attributes {stable_mosaic.version = 11 : i64} {
  func.func @_xent_kernel(%arg0: i32, %arg1: i32, %arg2: memref<16x32xf32, #tpu.memory_space<vmem>>, %arg3: memref<16x1xi32, #tpu.memory_space<vmem>>, %arg4: memref<1x1x1xf32, #tpu.memory_space<vmem>>, %arg5: memref<16x1xf32, #tpu.memory_space<vmem>>) attributes {dimension_semantics = [#tpu.dimension_semantics<parallel>, #tpu.dimension_semantics<arbitrary>], iteration_bounds = array<i64: 1, 1>, scalar_prefetch = 0 : i64, scratch_operands = 1 : i64, tpu.core_type = #tpu.core_type<tc>, window_params = [{transform_indices = @transform_0, window_bounds = array<i64: 16, 32>}, {transform_indices = @transform_1, window_bounds = array<i64: 16, 1>}, {transform_indices = @transform_2, window_bounds = array<i64: 1, 1, 1>}]} {
    %c0_i32 = arith.constant 0 : i32
    %0 = arith.cmpi eq, %arg1, %c0_i32 : i32
    %1 = arith.extui %0 : i1 to i32
    %c0_i32_0 = arith.constant 0 : i32
    %2 = arith.cmpi ne, %1, %c0_i32_0 : i32
    scf.if %2 {
      %cst_11 = arith.constant 0.000000e+00 : f32
      %25 = vector.broadcast %cst_11 : f32 to vector<16x1xf32>
      %c0_12 = arith.constant 0 : index
      %c0_13 = arith.constant 0 : index
      %26 = vector.load %arg5[%c0_12, %c0_13] : memref<16x1xf32, #tpu.memory_space<vmem>>, vector<16x1xf32>
      tpu.vector_store %arg5[%c0_12, %c0_13], %25 {strides = array<i32>} : memref<16x1xf32, #tpu.memory_space<vmem>>, vector<16x1xf32>,
    } else {
    }
    %c0 = arith.constant 0 : index
    %c0_1 = arith.constant 0 : index
    %3 = vector.load %arg2[%c0, %c0_1] : memref<16x32xf32, #tpu.memory_space<vmem>>, vector<16x32xf32>
    %c0_2 = arith.constant 0 : index
    %c0_3 = arith.constant 0 : index
    %4 = vector.load %arg3[%c0_2, %c0_3] : memref<16x1xi32, #tpu.memory_space<vmem>>, vector<16x1xi32>
    %c32_i32 = arith.constant 32 : i32
    %5 = arith.muli %arg1, %c32_i32 : i32
    %6 = tpu.iota {dimensions = array<i32: 1>} : vector<16x32xi32>
    %7 = vector.broadcast %5 : i32 to vector<16x32xi32>
    %8 = arith.addi %7, %6 : vector<16x32xi32>
    %9 = vector.broadcast %4 : vector<16x1xi32> to vector<16x32xi32>
    %10 = arith.cmpi eq, %8, %9 : vector<16x32xi32>
    %c1_i32 = arith.constant 1 : i32
    %11 = vector.broadcast %c1_i32 : i32 to vector<16x1xi32>
    %12 = arith.cmpi ne, %4, %11 : vector<16x1xi32>
    %13 = vector.broadcast %12 : vector<16x1xi1> to vector<16x32xi1>
    %14 = arith.andi %10, %13 : vector<16x32xi1>
    %cst = arith.constant 0.000000e+00 : f32
    %15 = vector.broadcast %cst : f32 to vector<16x32xf32>
    %16 = arith.select %14, %3, %15 : vector<16x32xi1>, vector<16x32xf32>
    %c0_4 = arith.constant 0 : index
    %c0_5 = arith.constant 0 : index
    %17 = vector.load %arg5[%c0_4, %c0_5] : memref<16x1xf32, #tpu.memory_space<vmem>>, vector<16x1xf32>
    %cst_6 = arith.constant dense<0.000000e+00> : vector<16xf32>
    %18 = vector.multi_reduction <add>, %16, %cst_6 [1] : vector<16x32xf32> to vector<16xf32>
    %19 = vector.shape_cast %18 : vector<16xf32> to vector<16x1xf32>
    %20 = arith.addf %17, %19 : vector<16x1xf32>
    %c0_7 = arith.constant 0 : index
    %c0_8 = arith.constant 0 : index
    %21 = vector.load %arg5[%c0_7, %c0_8] : memref<16x1xf32, #tpu.memory_space<vmem>>, vector<16x1xf32>
    tpu.vector_store %arg5[%c0_7, %c0_8], %20 {strides = array<i32>} : memref<16x1xf32, #tpu.memory_space<vmem>>, vector<16x1xf32>,
    %c0_i32_9 = arith.constant 0 : i32
    %22 = arith.cmpi eq, %arg1, %c0_i32_9 : i32
    %23 = arith.extui %22 : i1 to i32
    %c0_i32_10 = arith.constant 0 : i32
    %24 = arith.cmpi ne, %23, %c0_i32_10 : i32
    scf.if %24 {
      %c0_11 = arith.constant 0 : index
      %c0_12 = arith.constant 0 : index
      %25 = vector.load %arg5[%c0_11, %c0_12] : memref<16x1xf32, #tpu.memory_space<vmem>>, vector<16x1xf32>
      %cst_13 = arith.constant dense<0.000000e+00> : vector<1xf32>
      %26 = vector.multi_reduction <add>, %25, %cst_13 [0] : vector<16x1xf32> to vector<1xf32>
      %27 = vector.shape_cast %26 : vector<1xf32> to vector<1x1xf32>
      %28 = vector.shape_cast %27 : vector<1x1xf32> to vector<1x1x1xf32>
      %c0_14 = arith.constant 0 : index
      %c0_15 = arith.constant 0 : index
      %c0_16 = arith.constant 0 : index
      %29 = vector.load %arg4[%c0_14, %c0_15, %c0_16] : memref<1x1x1xf32, #tpu.memory_space<vmem>>, vector<1x1x1xf32>
      tpu.vector_store %arg4[%c0_14, %c0_15, %c0_16], %28 {strides = array<i32>} : memref<1x1x1xf32, #tpu.memory_space<vmem>>, vector<1x1x1xf32>,
    } else {
    }
    return
  }
  func.func @transform_0(%arg0: i32, %arg1: i32) -> (i32, i32) {
    %c0_i32 = arith.constant 0 : i32
    return %arg0, %arg1 : i32, i32
  }
  func.func @transform_1(%arg0: i32, %arg1: i32) -> (i32, i32) {
    %c0_i32 = arith.constant 0 : i32
    %c0_i32_0 = arith.constant 0 : i32
    return %arg0, %c0_i32 : i32, i32
  }
  func.func @transform_2(%arg0: i32, %arg1: i32) -> (i32, i32, i32) {
    %c0_i32 = arith.constant 0 : i32
    %c0_i32_0 = arith.constant 0 : i32
    %c0_i32_1 = arith.constant 0 : i32
    return %arg0, %c0_i32, %c0_i32_0 : i32, i32, i32
  }
}

</mosaic_0001>

<bundles_post_ra>
// kernel: tpu_custom_call.1
= control target key start
LH: loop header
LB: loop body
LE: loop exit
PB: predicated region body
PF: predicated region fallthrough
CT: control target
= control target key end

     0   :  { %s162_s0 = inlined_call_operand.vmem [shape: f32[16,32], index: 0, kind: input, shape index: {}]   ;;  %s163_s1 = inlined_call_operand.vmem [shape: s32[16,1], index: 1, kind: input, shape index: {}]   ;;  %s164_s2 = inlined_call_operand.hbm [shape: f32[1,1,1], index: 2, kind: output, shape index: {}]  }
   0x1   :  { %v21_v0 = vld [vmem:[%s163_s1] sm:$0xff] }
   0x2   :  { %7 = vsyncpa [#allocation4], 0  ;;  %v129_v1 = vmov 0   ;;  %vm36_vm0 = vcmp.ne.s32.totalorder %v21_v0, 1  ;;  %v22_v3 = vld [vmem:[%s163_s1 + $0x8] sm:$0xff]  ;;  %v24_v5 = vlaneseq  ;;  %v19_v9 = vld [vmem:[%s162_s0] sm:$0xff] }
   0x3   :  { %101 = vset.pattern.permute.xlu0 %v129_v1  ;;  %102 = vset.pattern.permute.xlu1 %v129_v1  ;;  %v38_v2 = vsel %vm36_vm0, 1, %v129_v1  ;;  %vm37_vm1 = vcmp.ne.s32.totalorder %v22_v3, 1  ;;  %vm54_vm4 = vcmask 261120   ;;  %v20_v14 = vld [vmem:[%s162_s0 + $0x8] sm:$0xff]  ;;  %vm16_vm9 = vcmask 7168   ;;  %s131_s0 = smov [#allocation3]  }
   0x4   :  { %29 = vperm.xlu0 %101, %v21_v0   ;;  %41 = vperm.xlu1 %102, %v38_v2   ;;  %v39_v4 = vsel %vm37_vm1, 1, %v129_v1  ;;  %v25_v6 = vand.u32 127, %v24_v5  ;;  %v130_v17 = vmov 0.0   ;;  %s87_s16 = sshll.u32 %s131_s0, 4  ;;  %s89_s19 = sshll.u32 %s164_s2, 4  ;;  %vm80_vm10 = vcmask 0   ;;  %s88_s16 = int_to_ptr.vmem [resolvable:$true] %s87_s16  ;;  %s90_s19 = int_to_ptr.hbm [resolvable:$true] %s89_s19 }
   0x5   :  { %17 = vst.msk [vmem:[#allocation2] sm:$0xff] %vm16_vm9, %v130_v17 }
   0x6   :  { %18 = vst.msk [vmem:[#allocation2 + $0x8] sm:$0xff] %vm16_vm9, %v130_v17 }
   0xc   :  { %32 = vperm.xlu0 %101, %v22_v3   ;;  %44 = vperm.xlu1 %102, %v39_v4   ;;  %v52_v18 = vld [vmem:[#allocation2] sm:$0xff] }
   0xd   :  { %v53_v21 = vld [vmem:[#allocation2 + $0x8] sm:$0xff] }
  0x76   :  { %v30_v7 = vpop.permute.xlu0 %29  ;;  %v42_v8 = vpop.permute.xlu1 %41 }
  0x77   :  { %vm34_vm2 = vcmp.eq.s32.totalorder %v25_v6, %v30_v7  ;;  %vm46_vm3 = vcmp.eq.s32.totalorder %v42_v8, 1 }
  0x78   :  { %vm48_vm5 = vmand %vm34_vm2, %vm46_vm3 }
  0x79   :  { %v50_v10 = vsel %vm48_vm5, %v19_v9, 0.0 }
  0x7a   :  { %v55_v11 = vsel %vm54_vm4, %v50_v10, 0.0 }
  0x7b   :  { %56 = vadd.xlane.f32.xlu2 %v55_v11 }
  0x7e   :  { %v33_v12 = vpop.permute.xlu0 %32  ;;  %v45_v13 = vpop.permute.xlu1 %44 }
  0x7f   :  { %vm35_vm6 = vcmp.eq.s32.totalorder %v25_v6, %v33_v12  ;;  %vm47_vm7 = vcmp.eq.s32.totalorder %v45_v13, 1 }
  0x80   :  { %vm49_vm8 = vmand %vm35_vm6, %vm47_vm7 }
  0x81   :  { %v51_v15 = vsel %vm49_vm8, %v20_v14, 0.0 }
  0x82   :  { %v58_v16 = vsel %vm54_vm4, %v51_v15, 0.0 }
  0x83   :  { %59 = vadd.xlane.f32.xlu2 %v58_v16 }
  0xee   :  { %v57_v19 = vpop.xlane.xlu2 %56 }
  0xef   :  { %v61_v20 = vadd.f32 %v57_v19, %v52_v18 }
  0xf1   :  { %64 = vst.msk [vmem:[#allocation2] sm:$0xff] %vm16_vm9, %v61_v20 }
  0xf6   :  { %v60_v22 = vpop.xlane.xlu2 %59 }
  0xf7   :  { %v62_v23 = vadd.f32 %v60_v22, %v53_v21 }
  0xf8   :  { %v69_v24 = vld [vmem:[#allocation2] sm:$0xff] }
  0xf9   :  { %65 = vst.msk [vmem:[#allocation2 + $0x8] sm:$0xff] %vm16_vm9, %v62_v23  ;;  %v71_v26 = vsel %vm16_vm9, %v69_v24, 0.0 }
 0x100   :  { %v70_v25 = vld [vmem:[#allocation2 + $0x8] sm:$0xff] }
 0x101   :  { %v72_v27 = vsel %vm16_vm9, %v70_v25, 0.0 }
 0x102   :  { %v73_v28 = vadd.f32 %v72_v27, %v71_v26 }
 0x104   :  { %v74_v29 = vrot.slane %v73_v28, 4 }
 0x106   :  { %v75_v30 = vadd.f32 %v74_v29, %v73_v28 }
 0x108   :  { %v76_v31 = vrot.slane %v75_v30, 2 }
 0x10a   :  { %v77_v32 = vadd.f32 %v76_v31, %v75_v30 }
 0x10c   :  { %v78_v33 = vrot.slane %v77_v32, 1 }
 0x10e   :  { %v79_v34 = vadd.f32 %v78_v33, %v77_v32 }
 0x110   :  { %81 = vst.msk [vmem:[#allocation3] sm:$0x1] %vm80_vm10, %v79_v34 }
 0x111   :  { %92 = dma.vmem_to_hbm [thread:$0]  %s88_s16, 16, %s90_s19, [#allocation4]  }
 0x112   :  { %127 = dma.done.wait [#allocation4], 16  }
 0x113   :  { %128 = vsyncadd [#allocation4], 4294967280 }
 0x114   :  { %97 = vsyncpa [#allocation4], 1 }

</bundles_post_ra>
